<compile_context>
chip_gen: v5e
topology: v5e:2x2
jax: 0.10.0
libtpu: 0.0.40
codegen_flags: <defaults>
</compile_context>

<pallas_src>
import copy

import jax
import jax.numpy as jnp
from jax.experimental import pallas as pl
from jax.experimental.pallas import tpu as pltpu


def _round_up(x, m):
    return ((x + m - 1) // m) * m


# ------------------------- Pallas kernel (hot path) -------------------------

def _conv3x3_folded_kernel(x_ref, w_ref, b_ref, o_ref):
    # x_ref: (9*Cin, TM)   bf16  folded conv taps for this tile, spatial in lanes
    # w_ref: (Cout, 9*Cin) bf16  folded weights
    # b_ref: (Cout, 1)     f32
    # o_ref: (Cout, TM)    f32   lane-dense NCHW output tile (real channels only)
    acc = jnp.dot(w_ref[...], x_ref[...], preferred_element_type=jnp.float32)
    # bias (lane broadcast) + ReLU epilogue, all in f32 (v5e has no bf16 VPU path)
    o_ref[...] = jnp.maximum(acc + b_ref[...], 0.0)


def conv2d_bias_relu_pallas(x_nchw, w_oihw, bias, *, tm=512):
    """Matches F.relu(F.conv2d(x, w, b, stride=1, padding=1)) for NCHW inputs."""
    B, Cin, H, W = x_nchw.shape
    Cout, Cin_w, kh, kw = w_oihw.shape
    assert Cin == Cin_w and kh == 3 and kw == 3

    Hp, Wp = H + 2, W + 2                     # padded spatial dims (pad = 1)
    M_out = H * Wp                            # flattened output rows (junk cols kept)
    TM = _round_up(min(tm, _round_up(M_out, 128)), 128)   # lane-tile, mult. of 128
    m_tiles = pl.cdiv(M_out, TM)
    M_pad = m_tiles * TM
    K = 9 * Cin                               # folded contraction dim
    offs = tuple(ki * Wp + kj for ki in range(3) for kj in range(3))
    Np = M_pad + 2 * Wp + 2                   # source length covering all tap shifts

    # ---- glue (plain JAX, fused by XLA) -------------------------------------
    # channel-major padded flat image (spatial in the minor axis), bf16
    xp = jnp.pad(x_nchw.astype(jnp.bfloat16), ((0, 0), (0, 0), (1, 1), (1, 1)))
    xp_flat = xp.reshape(B, Cin, Hp * Wp)
    xp_flat = jnp.pad(xp_flat, ((0, 0), (0, 0), (0, Np - Hp * Wp)))
    # fold the 9 taps into K: xf[b, t*Cin + c, m] = xp[b, c, m + off_t]
    xf = jnp.stack([xp_flat[:, :, o:o + M_pad] for o in offs], axis=1)
    xf = xf.reshape(B, K, M_pad)

    # weights: OIHW -> (ki, kj, Cin, Cout) -> (K, Cout) -> (Cout, K), bf16
    w_lhs = jnp.transpose(w_oihw, (2, 3, 1, 0)).reshape(K, Cout).T
    w_lhs = w_lhs.astype(jnp.bfloat16)
    b_col = bias.astype(jnp.float32).reshape(Cout, 1)

    # real-work cost estimate (no padded Cout / padded-M inflation)
    flops = 2 * B * M_out * K * Cout
    bytes_accessed = (B * K * M_pad * 2 + Cout * K * 2 + Cout * 4
                      + B * Cout * M_pad * 4)
    # tight VMEM budget: double-buffered xf / w / bias / out blocks + headroom
    cout_sl = _round_up(Cout, 8)
    vmem_need = 2 * (K * TM * 2 + Cout * K * 2 + 8 * 128 * 4 + cout_sl * TM * 4)
    vmem_limit = int(max(2 << 20, _round_up(4 * vmem_need, 1 << 20)))

    out_flat = pl.pallas_call(
        _conv3x3_folded_kernel,
        out_shape=jax.ShapeDtypeStruct((B, Cout, M_pad), jnp.float32),
        grid=(B, m_tiles),
        in_specs=[
            pl.BlockSpec((None, K, TM), lambda b, m: (b, 0, m)),   # folded taps
            pl.BlockSpec((Cout, K), lambda b, m: (0, 0)),          # weights (tiny)
            pl.BlockSpec((Cout, 1), lambda b, m: (0, 0)),          # bias
        ],
        out_specs=pl.BlockSpec((None, Cout, TM), lambda b, m: (b, 0, m)),
        compiler_params=pltpu.CompilerParams(
            dimension_semantics=("parallel", "parallel"),
            vmem_limit_bytes=vmem_limit),
        cost_estimate=pl.CostEstimate(flops=flops, transcendentals=0,
                                      bytes_accessed=bytes_accessed),
    )(xf, w_lhs, b_col)

    # drop junk columns / padded rows; result is already NCHW (no transpose)
    out = out_flat[:, :, :M_out].reshape(B, Cout, H, Wp)[:, :, :, :W]
    return out


# ----------------------- ModelHelper-equivalent wrapper ----------------------

class ConvBackbone:
    """The single submodule ModelHelper builds from cfg; returns a dict with
    'features', matching the UniAD backbone contract."""

    def __init__(self, inplanes, outplanes, key):
        k_w, k_b = jax.random.split(key)
        # deterministic synthetic init (no checkpoint load)
        self.weight = 0.1 * jax.random.normal(
            k_w, (outplanes, inplanes, 3, 3), dtype=jnp.float32)
        self.bias = 0.1 * jax.random.normal(k_b, (outplanes,), dtype=jnp.float32)
        self._fwd = jax.jit(conv2d_bias_relu_pallas)

    def __call__(self, inp):
        feats = self._fwd(inp["image"], self.weight, self.bias)
        return {"features": feats}


class ModelHelperJAX:
    """Mirrors ModelHelper.forward: shallow-copies input, runs its (single)
    child submodule, returns output['features']."""

    def __init__(self, cfg, key):
        self._children = []
        for cfg_subnet in cfg:
            kwargs = cfg_subnet["kwargs"]
            module = ConvBackbone(kwargs["inplanes"], kwargs["outplanes"], key)
            self._children.append(module)
            break  # ModelHelper.__init__ has `break` after the first subnet

    def forward(self, input):
        input = copy.copy(input)
        # TODO(synk): device transfer (`input.cuda()`) has no Pallas equivalent;
        # JAX arrays are already on the default (TPU) device.
        output = None
        for submodule in self._children:
            output = submodule(input)
        return output["features"]


# ----------------------------------- main ------------------------------------

if __name__ == "__main__":
    key = jax.random.PRNGKey(0)
    k_x, k_params = jax.random.split(key)

    B, Cin, H, W = 2, 4, 16, 16
    Cout = 8
    x = jax.random.normal(k_x, (B, Cin, H, W), dtype=jnp.float32)

    cfg = [{
        "name": "backbone",
        "type": "synthetic.ConvBackbone",
        "kwargs": {"inplanes": Cin, "outplanes": Cout},
    }]
    model = ModelHelperJAX(cfg, k_params)

    feats = model.forward({"image": x})
    feats = jax.block_until_ready(feats)
    assert feats.shape == (B, Cout, H, W)

    # Correctness check against an XLA reference on identical bf16-rounded operands.
    xr = x.astype(jnp.bfloat16).astype(jnp.float32)
    wr = model._children[0].weight.astype(jnp.bfloat16).astype(jnp.float32)
    br = model._children[0].bias
    ref = jax.lax.conv_general_dilated(
        xr, wr, window_strides=(1, 1), padding=((1, 1), (1, 1)),
        dimension_numbers=("NCHW", "OIHW", "NCHW"))
    ref = jnp.maximum(ref + br.reshape(1, -1, 1, 1), 0.0)
    err = float(jnp.max(jnp.abs(feats - ref)))
    assert jnp.allclose(feats, ref, atol=1e-3, rtol=1e-3), err

    print("KERNEL_OK")
</pallas_src>

<mosaic_0001>
module attributes {stable_mosaic.version = 11 : i64} {
  func.func @_conv3x3_folded_kernel(%arg0: i32, %arg1: i32, %arg2: memref<1x36x384xbf16, #tpu.memory_space<vmem>>, %arg3: memref<8x36xbf16, #tpu.memory_space<vmem>>, %arg4: memref<8x1xf32, #tpu.memory_space<vmem>>, %arg5: memref<1x8x384xf32, #tpu.memory_space<vmem>>) attributes {dimension_semantics = [#tpu.dimension_semantics<parallel>, #tpu.dimension_semantics<parallel>], iteration_bounds = array<i64: 2, 1>, scalar_prefetch = 0 : i64, scratch_operands = 0 : i64, tpu.core_type = #tpu.core_type<tc>, window_params = [{transform_indices = @transform_0, window_bounds = array<i64: 1, 36, 384>}, {pipeline_mode = #tpu.pipeline_mode<synchronous>, transform_indices = @transform_1, window_bounds = array<i64: 8, 36>}, {pipeline_mode = #tpu.pipeline_mode<synchronous>, transform_indices = @transform_2, window_bounds = array<i64: 8, 1>}, {transform_indices = @transform_3, window_bounds = array<i64: 1, 8, 384>}]} {
    %c0 = arith.constant 0 : index
    %c0_0 = arith.constant 0 : index
    %0 = vector.load %arg3[%c0, %c0_0] : memref<8x36xbf16, #tpu.memory_space<vmem>>, vector<8x36xbf16>
    %c0_1 = arith.constant 0 : index
    %c0_2 = arith.constant 0 : index
    %c0_3 = arith.constant 0 : index
    %1 = vector.load %arg2[%c0_1, %c0_2, %c0_3] : memref<1x36x384xbf16, #tpu.memory_space<vmem>>, vector<1x36x384xbf16>
    %2 = vector.shape_cast %1 : vector<1x36x384xbf16> to vector<36x384xbf16>
    %cst = arith.constant dense<0.000000e+00> : vector<8x384xf32>
    %3 = tpu.matmul %0, %2, %cst {dimension_numbers = #tpu.dot_dimension_numbers<[1], [0], [0], [1], [0, 0, 1, 1], [], []>} : vector<8x36xbf16>, vector<36x384xbf16>, vector<8x384xf32> -> vector<8x384xf32>
    %c0_4 = arith.constant 0 : index
    %c0_5 = arith.constant 0 : index
    %4 = vector.load %arg4[%c0_4, %c0_5] : memref<8x1xf32, #tpu.memory_space<vmem>>, vector<8x1xf32>
    %5 = vector.broadcast %4 : vector<8x1xf32> to vector<8x384xf32>
    %6 = arith.addf %3, %5 : vector<8x384xf32>
    %cst_6 = arith.constant 0.000000e+00 : f32
    %7 = vector.broadcast %cst_6 : f32 to vector<8x384xf32>
    %8 = arith.maximumf %6, %7 : vector<8x384xf32>
    %c0_7 = arith.constant 0 : index
    %c0_8 = arith.constant 0 : index
    %c0_9 = arith.constant 0 : index
    %9 = vector.load %arg5[%c0_7, %c0_8, %c0_9] : memref<1x8x384xf32, #tpu.memory_space<vmem>>, vector<1x8x384xf32>
    %10 = vector.shape_cast %9 : vector<1x8x384xf32> to vector<8x384xf32>
    %11 = vector.shape_cast %8 : vector<8x384xf32> to vector<1x8x384xf32>
    tpu.vector_store %arg5[%c0_7, %c0_8, %c0_9], %11 {strides = array<i32>} : memref<1x8x384xf32, #tpu.memory_space<vmem>>, vector<1x8x384xf32>,
    return
  }
  func.func @transform_0(%arg0: i32, %arg1: i32) -> (i32, i32, i32) {
    %c0_i32 = arith.constant 0 : i32
    %c0_i32_0 = arith.constant 0 : i32
    return %arg0, %c0_i32, %arg1 : i32, i32, i32
  }
  func.func @transform_1(%arg0: i32, %arg1: i32) -> (i32, i32) {
    %c0_i32 = arith.constant 0 : i32
    %c0_i32_0 = arith.constant 0 : i32
    %c0_i32_1 = arith.constant 0 : i32
    return %c0_i32, %c0_i32_0 : i32, i32
  }
  func.func @transform_2(%arg0: i32, %arg1: i32) -> (i32, i32) {
    %c0_i32 = arith.constant 0 : i32
    %c0_i32_0 = arith.constant 0 : i32
    %c0_i32_1 = arith.constant 0 : i32
    return %c0_i32, %c0_i32_0 : i32, i32
  }
  func.func @transform_3(%arg0: i32, %arg1: i32) -> (i32, i32, i32) {
    %c0_i32 = arith.constant 0 : i32
    %c0_i32_0 = arith.constant 0 : i32
    return %arg0, %c0_i32, %arg1 : i32, i32, i32
  }
}

</mosaic_0001>

<bundles_post_ra>
// kernel: conv2d_bias_relu_pallas.1
= control target key start
LH: loop header
LB: loop body
LE: loop exit
PB: predicated region body
PF: predicated region fallthrough
CT: control target
= control target key end

     0   :  { %s529_s12 = smov 0   ;;  %s531_s13 = smov 0   ;;  %s572_s0 = inlined_call_operand.vmem [shape: bf16[2,36,384], index: 0, kind: input, shape index: {}]   ;;  %s573_s1 = inlined_call_operand.vmem [shape: bf16[8,36], index: 1, kind: input, shape index: {}]   ;;  %s574_s2 = inlined_call_operand.vmem [shape: f32[8,1], index: 2, kind: input, shape index: {}]   ;;  %s575_s3 = inlined_call_operand.vmem [shape: f32[2,8,384], index: 3, kind: output, shape index: {}]  }
   0x1   :  { %s533_s14 = smov 0  }
   0x2 LB: > { %s25_s15 = sadd.s32 1, %s502_s13  ;;  %p418_p0 = scmp.ge.s32.totalorder %s506_s14, 1  ;;  %s506_s14 = sphi %s533_s14, %s13_s14   ;;  %s502_s13 = sphi %s531_s13, %s577_s13   ;;  %s498_s12 = sphi %s529_s12, %s576_s12  }
   0x3   : > { %p27_p1 = scmp.ge.s32.totalorder %s25_s15, 2  ;;  %p158_p2 = scmp.lt.s32.totalorder %s506_s14, 3 }
   0x5   : > { %s579_s15 = smov (%p27_p1, %s25_s15), 0  ;;  %p159_p3 = pnand %p418_p0, %p158_p2 }
   0x6   : > { %p191_p4 = scmp.lt.s32.totalorder (!%p159_p3), %s498_s12, 1 }
   0x7   : > { %162 = sbr.rel (%p159_p3) target bundleno = 174 (0xae), region = 32 }
   0xc   : > { %v508_v0 = vmov 0   ;;  %v222_v1 = vld [vmem:[%s574_s2] sm:$0xff]  ;;  %s581_s12 = smov (!%p191_p4, %s498_s12), 1  ;;  %vm272_vm0 = vcmask 1041408   ;;  %vm268_vm1 = vcmask 293888  }
   0xd   : > { %483 = vset.pattern.permute.xlu0 %v508_v0  ;;  %s456_s18 = smul.u32 60, %s581_s12  ;;  %v211_v31 = vld [vmem:[%s573_s1] sm:$0xf] }
   0xe   : > { %225 = vperm.xlu0 %483, %v222_v1   ;;  %s457_s24 = smul.u32 24, %s581_s12 }
   0xf   : > { %s198_s21 = scalar_lea.vmem %s572_s0, %s456_s18 }
  0x10   : > { %v220_v2 = vld [vmem:[%s198_s21 + $0x30] sm:$0x33]  ;;  %v221_v3 = vld [vmem:[%s198_s21 + $0x38] sm:$0x3]  ;;  %v454_v11 = vld [vmem:[%s198_s21 + $0x20] sm:$0xf0]  ;;  %s208_s27 = scalar_lea.vmem %s575_s3, %s457_s24 }
  0x11   : > { %v250_v4 = vunpack.c.l.b16 %v220_v2  ;;  %v251_v5 = vunpack.c.h.b16 %v220_v2  ;;  %v252_v6 = vunpack.c.l.b16 %v221_v3  ;;  %v435_v7 = vld [vmem:[%s198_s21 + $0x18] sm:$0xf]  ;;  %v453_v12 = vld [vmem:[%s198_s21 + $0x1c] sm:$0xf]  ;;  %v437_v13 = vld [vmem:[%s198_s21 + $0x24] sm:$0xf0] }
  0x12   : > { %v443_v14 = vld [vmem:[%s198_s21 + $0x20] sm:$0xf]  ;;  %v455_v15 = vld [vmem:[%s198_s21 + $0x28] sm:$0xf0]  ;;  %v436_v19 = vor.u32 %v454_v11, %v435_v7  ;;  %v440_v20 = vor.u32 %v453_v12, %v437_v13  ;;  %v450_v24 = vld [vmem:[%s198_s21 + $0x4] sm:$0xf] }
  0x13   : > { %v259_v8 = vpack.c.b16 %v250_v4, %v250_v4  ;;  %v260_v9 = vpack.c.b16 %v251_v5, %v251_v5  ;;  %v261_v10 = vpack.c.b16 %v252_v6, %v252_v6  ;;  %v423_v21 = vld [vmem:[%s198_s21] sm:$0xf]  ;;  %v444_v22 = vor.u32 %v455_v15, %v443_v14  ;;  %v451_v23 = vld [vmem:[%s198_s21 + $0x8] sm:$0xf0]  ;;  %v425_v25 = vld [vmem:[%s198_s21 + $0xc] sm:$0xf0] }
  0x14   : > { %v431_v26 = vld [vmem:[%s198_s21 + $0x8] sm:$0xf]  ;;  %v452_v27 = vld [vmem:[%s198_s21 + $0x10] sm:$0xf0]  ;;  %v424_v28 = vor.u32 %v451_v23, %v423_v21  ;;  %v428_v29 = vor.u32 %v450_v24, %v425_v25 }
  0x15   : > { %v274_v16 = vsel %vm272_vm0, %v259_v8, 0  ;;  %v277_v17 = vsel %vm272_vm0, %v260_v9, 0  ;;  %v280_v18 = vsel %vm272_vm0, %v261_v10, 0  ;;  %v432_v30 = vor.u32 %v452_v27, %v431_v26 }
  0x16   : > { %287 = vmatpush.bf16.msra.mxu0 %v274_v16  ;;  %300 = vmatpush.bf16.msra.mxu1 %v277_v17 }
  0x17   : > { %313 = vmatpush.bf16.msra.mxu2 %v280_v18 }
  0x1a   : > { %288 = vmatpush.bf16.msra.mxu0 %v436_v19  ;;  %301 = vmatpush.bf16.msra.mxu1 %v440_v20 }
  0x1b   : > { %314 = vmatpush.bf16.msra.mxu2 %v444_v22 }
  0x1e   : > { %289 = vmatpush.bf16.msra.mxu0 %v424_v28  ;;  %302 = vmatpush.bf16.msra.mxu1 %v428_v29 }
  0x1f   : > { %315 = vmatpush.bf16.msra.mxu2 %v432_v30 }
  0x21   : > { %445 = vmatmul.msk.bf16.vlgmr.msra.gmra.mxu0 %vm268_vm1, %v211_v31  ;;  %446 = vmatmul.msk.bf16.vlgmr.msra.gmra.mxu1 %vm268_vm1, %v211_v31 }
  0x22   : > { %447 = vmatmul.msk.bf16.vlgmr.msra.gmra.mxu2 %vm268_vm1, %v211_v31 }
  0x80   : > { %v226_v32 = vpop.permute.xlu0 %225 }
  0x9e   : > { %v291_v33 = vpop.f32.mrf.mxu0  ;;  %v304_v34 = vpop.f32.mrf.mxu1 }
  0x9f   : > { %v292_v35 = vadd.f32 %v291_v33, %v226_v32  ;;  %v305_v36 = vadd.f32 %v304_v34, %v226_v32 }
  0xa1   : > { %v321_v37 = vmax.f32 %v292_v35, 0.0  ;;  %v322_v38 = vmax.f32 %v305_v36, 0.0 }
  0xa3   : > { %324 = vst [vmem:[%s208_s27] sm:$0xff] %v321_v37 }
  0xa4   : > { %325 = vst [vmem:[%s208_s27 + $0x8] sm:$0xff] %v322_v38 }
  0xa5   : > { %v317_v39 = vpop.f32.mrf.mxu2 }
  0xa6   : > { %v318_v40 = vadd.f32 %v317_v39, %v226_v32  ;;  %v293_v41 = vpop.f32.mrf.mxu0  ;;  %v306_v42 = vpop.f32.mrf.mxu1 }
  0xa8   : > { %v323_v43 = vmax.f32 %v318_v40, 0.0 }
  0xaa   : > { %326 = vst [vmem:[%s208_s27 + $0x10] sm:$0xff] %v323_v43 }
  0xad   : > { %v319_v44 = vpop.f32.mrf.mxu2 }
  0xae PF: > { %s13_s14 = sadd.s32 1, %s506_s14   ;;  %s576_s12 = smov %s502_s13 }
  0xaf   : > { %p10_p5 = scmp.ge.s32.totalorder %s13_s14, 4   ;;  %s577_s13 = smov %s579_s15 }
  0xb1   :  { %12 = sbr.rel (!%p10_p5) target bundleno = 2 (0x2), region = 62 }

</bundles_post_ra>
